<compile_context>
chip_gen: v7x
topology: tpu7x:2x2x1
jax: 0.10.0
libtpu: 0.0.40
codegen_flags: <defaults>
</compile_context>

<pallas_src>
import jax
import jax.numpy as jnp
from jax.experimental import pallas as pl
from jax.experimental.pallas import tpu as pltpu

_TILE_P = 2048  # packed rows per grid step (= 16384 original rows).
                # (2048, 128) f32 = 1 MiB per buffer; see VMEM budget above.


def _round_up(x, m):
    return (x + m - 1) // m * m


def _fused_cat_linear_kernel(xa_ref, xb_ref, w_ref, b_ref, o_ref):
    # xa/xb : (tile_p, 128) lane-dense packed activations
    # w     : (256, 128) stacked block-diagonal weight (VMEM-resident)
    # b     : (1, 128)   lane-tiled bias               (VMEM-resident)
    # o     : (tile_p, 128) lane-dense packed output
    x_cat = jnp.concatenate([xa_ref[...], xb_ref[...]], axis=-1)  # (tile_p, 256)
    acc = jnp.dot(x_cat, w_ref[...], preferred_element_type=jnp.float32)
    o_ref[...] = (acc + b_ref[...]).astype(o_ref.dtype)


def prepare_params(weight, bias):
    """One-time parameter prep (call OUTSIDE the jitted forward).

    weight: [OUT, 2L] PyTorch nn.Linear layout; bias: [OUT].
    Returns
      w_packed: [2*PACK*L, PACK*OUT] = [256, 128] stacked block-diagonal
                weight (top half applies to x_a lanes, bottom half to x_b).
      b_packed: [1, PACK*OUT] = [1, 128] lane-tiled bias.
    with PACK = 128 // L packed original rows per lane-dense row.
    """
    out_dim, in_dim = weight.shape
    L = in_dim // 2
    assert out_dim == L and 128 % L == 0, "packing assumes OUT == L and L | 128"
    pack = 128 // L
    eye = jnp.eye(pack, dtype=weight.dtype)
    # kron(I_pack, w.T)[i*L + f, j*OUT + o] = (i == j) * w[o, f]
    wa_blk = jnp.kron(eye, weight[:, :L].T)                 # (PACK*L, PACK*OUT)
    wb_blk = jnp.kron(eye, weight[:, L:].T)                 # (PACK*L, PACK*OUT)
    w_packed = jnp.concatenate([wa_blk, wb_blk], axis=0)    # (256, 128)
    b_packed = jnp.tile(bias, pack).reshape(1, pack * out_dim)  # (1, 128)
    return w_packed, b_packed


@jax.jit
def fused_cat_linear(x_a, x_b, w_packed, b_packed):
    """preds = cat([x_a, x_b], -1) @ W.T + b, concat + lane-repack fused away."""
    B, L = x_a.shape
    pack = 128 // L
    out_dim = w_packed.shape[1] // pack
    lane_in = pack * L          # 128
    lane_out = pack * out_dim   # 128

    # Tiny tail pad only if B is not a multiple of the pack factor (<8 rows).
    pad = (-B) % pack
    if pad:
        x_a = jnp.pad(x_a, ((0, pad), (0, 0)))
        x_b = jnp.pad(x_b, ((0, pad), (0, 0)))
    bp = (B + pad) // pack      # packed rows

    # Free row-major views: (B, L) -> (B//PACK, 128); lane = row_in_group*L + f.
    xa_p = x_a.reshape(bp, lane_in)
    xb_p = x_b.reshape(bp, lane_in)

    # Tile selection: as big as possible, multiple of 8 sublanes, but capped so
    # grid >= 2 when the batch is big enough (lets v7x's 2 TCs both issue DMA).
    if bp <= 8:
        tile_p = bp                                   # single full-array block
    else:
        tile_p = min(_TILE_P, _round_up(pl.cdiv(bp, 2), 8))
    grid_p = pl.cdiv(bp, tile_p)   # ragged last block handled by Pallas masking

    out_p = pl.pallas_call(
        _fused_cat_linear_kernel,
        out_shape=jax.ShapeDtypeStruct((bp, lane_out), x_a.dtype),
        grid_spec=pltpu.PrefetchScalarGridSpec(
            num_scalar_prefetch=0,
            grid=(grid_p,),
            in_specs=[
                pl.BlockSpec((tile_p, lane_in), lambda i: (i, 0)),          # x_a
                pl.BlockSpec((tile_p, lane_in), lambda i: (i, 0)),          # x_b
                pl.BlockSpec((2 * lane_in, lane_out), lambda i: (0, 0)),    # W (resident)
                pl.BlockSpec((1, lane_out), lambda i: (0, 0)),              # bias (resident)
            ],
            out_specs=pl.BlockSpec((tile_p, lane_out), lambda i: (i, 0)),
        ),
        compiler_params=pltpu.CompilerParams(
            # Batch tiles are independent -> shard the grid across v7x's 2 TCs.
            dimension_semantics=("parallel",),
        ),
        cost_estimate=pl.CostEstimate(
            flops=2 * bp * (2 * lane_in) * lane_out,
            bytes_accessed=4 * (2 * bp * lane_in + bp * lane_out
                                + 2 * lane_in * lane_out + lane_out),
            transcendentals=0,
        ),
    )(xa_p, xb_p, w_packed, b_packed)

    out = out_p.reshape(bp * pack, out_dim)   # free row-major view back
    return out[:B] if pad else out


if __name__ == "__main__":
    num_labels = 16
    L = num_labels
    in_dim = 2 * L

    key = jax.random.PRNGKey(0)
    k_xa, k_xb, k_w, k_b, k_xa2, k_xb2 = jax.random.split(key, 6)

    # Deterministic parameters, shapes matching nn.Linear(2*L, L).
    bound = 1.0 / jnp.sqrt(in_dim)
    weight = jax.random.uniform(k_w, (num_labels, in_dim),
                                minval=-bound, maxval=bound, dtype=jnp.float32)
    bias = jax.random.uniform(k_b, (num_labels,),
                              minval=-bound, maxval=bound, dtype=jnp.float32)
    w_packed, b_packed = prepare_params(weight, bias)  # one-time, outside jit

    # --- small demo shape: single full-array packed block, grid=(1,) ---
    batch = 16
    x_a = jax.random.normal(k_xa, (batch, L), dtype=jnp.float32)
    x_b = jax.random.normal(k_xb, (batch, L), dtype=jnp.float32)

    preds = jax.block_until_ready(fused_cat_linear(x_a, x_b, w_packed, b_packed))
    ref = jnp.concatenate([x_a, x_b], axis=-1) @ weight.T + bias
    assert preds.shape == (batch, num_labels)
    assert jnp.allclose(preds, ref, atol=1e-5, rtol=1e-5)

    # --- larger, ragged batch: B not a multiple of 8 (tiny tail pad), two grid
    #     steps, and a ragged last packed block handled by Pallas masking ---
    big_batch = 1003
    xa2 = jax.random.normal(k_xa2, (big_batch, L), dtype=jnp.float32)
    xb2 = jax.random.normal(k_xb2, (big_batch, L), dtype=jnp.float32)

    preds2 = jax.block_until_ready(fused_cat_linear(xa2, xb2, w_packed, b_packed))
    ref2 = jnp.concatenate([xa2, xb2], axis=-1) @ weight.T + bias
    assert preds2.shape == (big_batch, num_labels)
    assert jnp.allclose(preds2, ref2, atol=1e-5, rtol=1e-5)

    print("KERNEL_OK")
</pallas_src>

<mosaic_0001>
module attributes {stable_mosaic.version = 11 : i64} {
  func.func @_fused_cat_linear_kernel(%arg0: i32, %arg1: memref<2x128xf32, #tpu.memory_space<vmem>>, %arg2: memref<2x128xf32, #tpu.memory_space<vmem>>, %arg3: memref<256x128xf32, #tpu.memory_space<vmem>>, %arg4: memref<1x128xf32, #tpu.memory_space<vmem>>, %arg5: memref<2x128xf32, #tpu.memory_space<vmem>>) attributes {dimension_semantics = [#tpu.dimension_semantics<parallel>], iteration_bounds = array<i64: 1>, scalar_prefetch = 0 : i64, scratch_operands = 0 : i64, tpu.core_type = #tpu.core_type<tc>, window_params = [{transform_indices = @transform_0, window_bounds = array<i64: 2, 128>}, {transform_indices = @transform_1, window_bounds = array<i64: 2, 128>}, {pipeline_mode = #tpu.pipeline_mode<synchronous>, transform_indices = @transform_2, window_bounds = array<i64: 256, 128>}, {pipeline_mode = #tpu.pipeline_mode<synchronous>, transform_indices = @transform_3, window_bounds = array<i64: 1, 128>}, {transform_indices = @transform_4, window_bounds = array<i64: 2, 128>}]} {
    %c0 = arith.constant 0 : index
    %c0_0 = arith.constant 0 : index
    %0 = vector.load %arg1[%c0, %c0_0] : memref<2x128xf32, #tpu.memory_space<vmem>>, vector<2x128xf32>
    %c0_1 = arith.constant 0 : index
    %c0_2 = arith.constant 0 : index
    %1 = vector.load %arg2[%c0_1, %c0_2] : memref<2x128xf32, #tpu.memory_space<vmem>>, vector<2x128xf32>
    %2 = tpu.concatenate %0, %1 in 1 : vector<2x128xf32>, vector<2x128xf32> -> vector<2x256xf32>
    %c0_3 = arith.constant 0 : index
    %c0_4 = arith.constant 0 : index
    %3 = vector.load %arg3[%c0_3, %c0_4] : memref<256x128xf32, #tpu.memory_space<vmem>>, vector<256x128xf32>
    %cst = arith.constant dense<0.000000e+00> : vector<2x128xf32>
    %4 = tpu.matmul %2, %3, %cst {dimension_numbers = #tpu.dot_dimension_numbers<[1], [0], [0], [1], [0, 0, 1, 1], [], []>} : vector<2x256xf32>, vector<256x128xf32>, vector<2x128xf32> -> vector<2x128xf32>
    %c0_5 = arith.constant 0 : index
    %c0_6 = arith.constant 0 : index
    %5 = vector.load %arg4[%c0_5, %c0_6] : memref<1x128xf32, #tpu.memory_space<vmem>>, vector<1x128xf32>
    %6 = vector.broadcast %5 : vector<1x128xf32> to vector<2x128xf32>
    %7 = arith.addf %4, %6 : vector<2x128xf32>
    %c0_7 = arith.constant 0 : index
    %c0_8 = arith.constant 0 : index
    %8 = vector.load %arg5[%c0_7, %c0_8] : memref<2x128xf32, #tpu.memory_space<vmem>>, vector<2x128xf32>
    tpu.vector_store %arg5[%c0_7, %c0_8], %7 {strides = array<i32>} : memref<2x128xf32, #tpu.memory_space<vmem>>, vector<2x128xf32>,
    return
  }
  func.func @transform_0(%arg0: i32) -> (i32, i32) {
    %c0_i32 = arith.constant 0 : i32
    %c0_i32_0 = arith.constant 0 : i32
    return %arg0, %c0_i32 : i32, i32
  }
  func.func @transform_1(%arg0: i32) -> (i32, i32) {
    %c0_i32 = arith.constant 0 : i32
    %c0_i32_0 = arith.constant 0 : i32
    return %arg0, %c0_i32 : i32, i32
  }
  func.func @transform_2(%arg0: i32) -> (i32, i32) {
    %c0_i32 = arith.constant 0 : i32
    %c0_i32_0 = arith.constant 0 : i32
    %c0_i32_1 = arith.constant 0 : i32
    return %c0_i32, %c0_i32_0 : i32, i32
  }
  func.func @transform_3(%arg0: i32) -> (i32, i32) {
    %c0_i32 = arith.constant 0 : i32
    %c0_i32_0 = arith.constant 0 : i32
    %c0_i32_1 = arith.constant 0 : i32
    return %c0_i32, %c0_i32_0 : i32, i32
  }
  func.func @transform_4(%arg0: i32) -> (i32, i32) {
    %c0_i32 = arith.constant 0 : i32
    %c0_i32_0 = arith.constant 0 : i32
    return %arg0, %c0_i32 : i32, i32
  }
}

</mosaic_0001>

<bundles_post_ra>
// kernel: fused_cat_linear.1
= control target key start
LH: loop header
LB: loop body
LE: loop exit
PB: predicated region body
PF: predicated region fallthrough
CT: control target
= control target key end

     0   :  { %9 = vsyncpa [#allocation3], 0  ;;  %s243_s15 = smov [#allocation2]   ;;  %s295_s0 = inlined_call_operand.vmem [shape: f32[2,128], index: 0, kind: input, shape index: {}]   ;;  %s296_s1 = inlined_call_operand.vmem [shape: f32[2,128], index: 1, kind: input, shape index: {}]   ;;  %s297_s2 = inlined_call_operand.hbm [shape: f32[256,128], index: 2, kind: input, shape index: {}]   ;;  %s298_s3 = inlined_call_operand.vmem [shape: f32[1,128], index: 3, kind: input, shape index: {}]   ;;  %s299_s4 = inlined_call_operand.vmem [shape: f32[2,128], index: 4, kind: output, shape index: {}]  }
   0x1   :  { %s19_s16 = sshll.u32 %s243_s15, 4  ;;  %s219_s19 = scalar_lea.hbm %s297_s2, 4096  ;;  %s20_s16 = int_to_ptr.vmem [resolvable:$true] %s19_s16 }
   0x2   :  { %p220_p0 = scmp.ne.s32.totalorder %s297_s2, %s219_s19  ;;  %p223_p1 = scmp.lt.u32.totalorder %s219_s19, %s297_s2 }
   0x4   :  { %p225_p2 = pnand %p223_p1, %p220_p0 }
   0x6   :  { %228 = shalt.err (!%p225_p2)
}
   0x7   :  { %s229_s24 = scalar_lea.vmem %s20_s16, 4096  ;;  %p234_p4 = scmp.lt.s32.totalorder %s20_s16, %s20_s16 }
   0x8   :  { %p230_p3 = scmp.ne.s32.totalorder %s20_s16, %s229_s24  ;;  %p235_p5 = scmp.lt.s32.totalorder %s229_s24, %s229_s24 }
   0xa   :  { %p236_p6 = por %p235_p5, %p234_p4 }
   0xc   :  { %p237_p7 = pnand %p236_p6, %p230_p3 }
   0xe   :  { %240 = shalt.err (!%p237_p7)
}
   0xf   :  { %s244_s25 = smov 128   ;;  %s245_s26 = smov 8  }
  0x10   :  { %25 = dma.hbm_to_vmem [thread:$0]  %s297_s2, 4096, %s20_s16, [#allocation3], %s244_s25, %s244_s25, %s245_s26  }
  0x11   :  { %241 = dma.done.wait [#allocation3], 4096  }
  0x12   :  { %242 = vsyncadd [#allocation3], 4294963200  ;;  %v49_v0 = vld [vmem:[#allocation2 + $0x80] sm:$0xff]  ;;  %v50_v1 = vld [vmem:[#allocation2 + $0x88] sm:$0xff] }
  0x13   :  { %v33_v2 = vld [vmem:[#allocation2] sm:$0xff]  ;;  %v184_v3 = vpack.c.bf16 %v50_v1, %v49_v0  ;;  %v34_v4 = vld [vmem:[#allocation2 + $0x8] sm:$0xff]  ;;  %v51_v5 = vld [vmem:[#allocation2 + $0x90] sm:$0xff] }
  0x14   :  { %v52_v6 = vld [vmem:[#allocation2 + $0x98] sm:$0xff]  ;;  %v186_v7 = vpack.c.bf16 %v34_v4, %v33_v2  ;;  %v35_v9 = vld [vmem:[#allocation2 + $0x10] sm:$0xff]  ;;  %v53_v11 = vld [vmem:[#allocation2 + $0xa0] sm:$0xff] }
  0x15   :  { %v188_v8 = vpack.c.bf16 %v52_v6, %v51_v5  ;;  %v36_v10 = vld [vmem:[#allocation2 + $0x18] sm:$0xff]  ;;  %185 = vmatprep.subr.bf16.mxu0 %v184_v3  ;;  %v54_v12 = vld [vmem:[#allocation2 + $0xa8] sm:$0xff]  ;;  %v37_v15 = vld [vmem:[#allocation2 + $0x20] sm:$0xff] }
  0x16   :  { %187 = vmatpush3.bf16.msra.mxu0 %v186_v7  ;;  %v190_v13 = vpack.c.bf16 %v36_v10, %v35_v9  ;;  %v192_v14 = vpack.c.bf16 %v54_v12, %v53_v11  ;;  %v38_v16 = vld [vmem:[#allocation2 + $0x28] sm:$0xff]  ;;  %v55_v17 = vld [vmem:[#allocation2 + $0xb0] sm:$0xff]  ;;  %v56_v18 = vld [vmem:[#allocation2 + $0xb8] sm:$0xff] }
  0x17   :  { %189 = vmatprep.subr.bf16.mxu0 %v188_v8  ;;  %v194_v19 = vpack.c.bf16 %v38_v16, %v37_v15  ;;  %v196_v20 = vpack.c.bf16 %v56_v18, %v55_v17  ;;  %v39_v21 = vld [vmem:[#allocation2 + $0x30] sm:$0xff]  ;;  %v40_v22 = vld [vmem:[#allocation2 + $0x38] sm:$0xff]  ;;  %v57_v23 = vld [vmem:[#allocation2 + $0xc0] sm:$0xff] }
  0x18   :  { %v58_v24 = vld [vmem:[#allocation2 + $0xc8] sm:$0xff]  ;;  %v32_v25 = vld [vmem:[%s296_s1] sm:$0x3]  ;;  %v198_v26 = vpack.c.bf16 %v40_v22, %v39_v21  ;;  %v59_v30 = vld [vmem:[#allocation2 + $0xd0] sm:$0xff] }
  0x19   :  { %136 = vmatprep.mubr.f32.mxu0 %v32_v25  ;;  %v200_v27 = vpack.c.bf16 %v58_v24, %v57_v23  ;;  %v41_v28 = vld [vmem:[#allocation2 + $0x40] sm:$0xff]  ;;  %v42_v29 = vld [vmem:[#allocation2 + $0x48] sm:$0xff]  ;;  %v60_v31 = vld [vmem:[#allocation2 + $0xd8] sm:$0xff] }
  0x1a   :  { %191 = vmatpush3.bf16.msra.mxu0 %v190_v13  ;;  %v202_v32 = vpack.c.bf16 %v42_v29, %v41_v28  ;;  %v204_v33 = vpack.c.bf16 %v60_v31, %v59_v30  ;;  %v43_v34 = vld [vmem:[#allocation2 + $0x50] sm:$0xff]  ;;  %v44_v35 = vld [vmem:[#allocation2 + $0x58] sm:$0xff]  ;;  %v61_v36 = vld [vmem:[#allocation2 + $0xe0] sm:$0xff] }
  0x1b   :  { %193 = vmatprep.subr.bf16.mxu0 %v192_v14  ;;  %v62_v37 = vld [vmem:[#allocation2 + $0xe8] sm:$0xff]  ;;  %v206_v38 = vpack.c.bf16 %v44_v35, %v43_v34  ;;  %v45_v40 = vld [vmem:[#allocation2 + $0x60] sm:$0xff]  ;;  %v63_v42 = vld [vmem:[#allocation2 + $0xf0] sm:$0xff] }
  0x1c   :  { %v208_v39 = vpack.c.bf16 %v62_v37, %v61_v36  ;;  %v46_v41 = vld [vmem:[#allocation2 + $0x68] sm:$0xff]  ;;  %v64_v43 = vld [vmem:[#allocation2 + $0xf8] sm:$0xff]  ;;  %v47_v46 = vld [vmem:[#allocation2 + $0x70] sm:$0xff] }
  0x1d   :  { %v210_v44 = vpack.c.bf16 %v46_v41, %v45_v40  ;;  %v212_v45 = vpack.c.bf16 %v64_v43, %v63_v42  ;;  %v48_v47 = vld [vmem:[#allocation2 + $0x78] sm:$0xff]  ;;  %v31_v49 = vld [vmem:[%s295_s0] sm:$0x3] }
  0x1e   :  { %195 = vmatpush3.bf16.msra.mxu0 %v194_v19  ;;  %v214_v48 = vpack.c.bf16 %v48_v47, %v47_v46  ;;  %v148_v51 = vld [vmem:[%s298_s3] ss:$0 sm:$0xff] }
  0x1f   :  { %197 = vmatprep.subr.bf16.mxu0 %v196_v20 }
  0x22   :  { %199 = vmatpush3.bf16.msra.mxu0 %v198_v26 }
  0x23   :  { %201 = vmatprep.subr.bf16.mxu0 %v200_v27 }
  0x26   :  { %203 = vmatpush3.bf16.msra.mxu0 %v202_v32 }
  0x27   :  { %205 = vmatprep.subr.bf16.mxu0 %v204_v33 }
  0x2a   :  { %207 = vmatpush3.bf16.msra.mxu0 %v206_v38 }
  0x2b   :  { %209 = vmatprep.subr.bf16.mxu0 %v208_v39 }
  0x2e   :  { %211 = vmatpush3.bf16.msra.mxu0 %v210_v44 }
  0x2f   :  { %213 = vmatprep.subr.bf16.mxu0 %v212_v45 }
  0x32   :  { %215 = vmatpush3.bf16.msra.mxu0 %v214_v48 }
  0x35   :  { %137 = vmatmul.mubr.f32.vlgmr.msra.gmra.mrb[0].mxu0 %v31_v49 }
 0x108   :  { %v181_v50 = vpop.f32.mrb[0].mxu0 }
 0x109   :  { %v182_v52 = vpop.f32.mrb[1].mxu0 }
 0x10a   :  { %v183_v53 = vadd.f32 %v182_v52, %v181_v50 }
 0x10c   :  { %v139_v54 = vadd.f32 %v183_v53, %v148_v51 }
 0x10e   :  { %142 = vst [vmem:[%s299_s4] sm:$0x3] %v139_v54 }
 0x10f   :  { %147 = vsyncpa [#allocation3], 1 }

</bundles_post_ra>
